<compile_context>
chip_gen: v7x
topology: tpu7x:2x2x1
jax: 0.10.0
libtpu: 0.0.40
codegen_flags: <defaults>
</compile_context>

<pallas_src>
import jax
import jax.numpy as jnp
from jax.experimental import pallas as pl
from jax.experimental.pallas import tpu as pltpu

LATENT = 128          # GNN latent_size and proj hidden/output width
MAX_TB = 512          # max batch-tile rows


def proj_mlp_kernel(x_ref, w1_ref, b1_ref, w2_ref, b2_ref, o_ref):
    # x_ref: (TB, 128) f32 ; w1/w2: (128, 128) bf16 ; b1/b2: (1, 128) f32
    x = x_ref[...].astype(jnp.bfloat16)                        # bf16 MXU operands
    h = jnp.dot(x, w1_ref[...], preferred_element_type=jnp.float32) + b1_ref[...]
    h = jnp.maximum(h, 0.0)                                    # ReLU (f32 VPU)
    y = jnp.dot(h.astype(jnp.bfloat16), w2_ref[...],
                preferred_element_type=jnp.float32) + b2_ref[...]
    o_ref[...] = y.astype(o_ref.dtype)


def _choose_tile(B):
    """Batch tile: up to MAX_TB rows, multiple of 8, >=2 grid steps when B allows
    (so dimension_semantics=("parallel",) can use both v7x TensorCores)."""
    tb = min(MAX_TB, max(8, pl.cdiv(B, 2)))
    return ((tb + 7) // 8) * 8


def med_model_forward(mol_gnn_out, params):
    """mol_gnn_out: [B, 1, LATENT] float32 (the GNN output). Returns [B, LATENT]."""
    w1, b1, w2, b2 = params
    B, one, D = mol_gnn_out.shape
    assert one == 1 and D == LATENT

    tb = _choose_tile(B)
    b_pad = pl.cdiv(B, tb) * tb
    x3 = mol_gnn_out
    if b_pad != B:                                             # pad ragged tail
        x3 = jnp.pad(x3, ((0, b_pad - B), (0, 0), (0, 0)))

    # Weights in bf16 (full-rate MXU, half the weight bytes); biases stay f32.
    w1b = w1.astype(jnp.bfloat16)
    w2b = w2.astype(jnp.bfloat16)

    grid = (b_pad // tb,)
    out = pl.pallas_call(
        proj_mlp_kernel,
        out_shape=jax.ShapeDtypeStruct((b_pad, D), mol_gnn_out.dtype),
        grid_spec=pltpu.PrefetchScalarGridSpec(
            num_scalar_prefetch=0,
            grid=grid,
            in_specs=[
                # [B, 1, 128] consumed directly; the size-1 dim is squeezed so
                # the kernel sees a lane-dense (tb, 128) tile.
                pl.BlockSpec((tb, pl.Squeezed(), D), lambda i: (i, 0, 0)),
                pl.BlockSpec((D, D), lambda i: (0, 0)),        # W1 (resident)
                pl.BlockSpec((1, D), lambda i: (0, 0)),        # b1
                pl.BlockSpec((D, D), lambda i: (0, 0)),        # W2
                pl.BlockSpec((1, D), lambda i: (0, 0)),        # b2
            ],
            out_specs=pl.BlockSpec((tb, D), lambda i: (i, 0)),
        ),
        compiler_params=pltpu.CompilerParams(
            dimension_semantics=("parallel",)),
    )(x3, w1b, b1, w2b, b2)

    return out[:B] if b_pad != B else out


def init_params(key):
    """Deterministic init mimicking torch.nn.Linear default (uniform +-1/sqrt(fan_in))."""
    k1, k2, k3, k4 = jax.random.split(key, 4)
    bound = 1.0 / jnp.sqrt(jnp.float32(LATENT))
    w1 = jax.random.uniform(k1, (LATENT, LATENT), jnp.float32, -bound, bound)
    b1 = jax.random.uniform(k2, (1, LATENT), jnp.float32, -bound, bound)
    w2 = jax.random.uniform(k3, (LATENT, LATENT), jnp.float32, -bound, bound)
    b2 = jax.random.uniform(k4, (1, LATENT), jnp.float32, -bound, bound)
    return w1, b1, w2, b2


def _reference(mol_gnn_out, params):
    """Pure-JAX f32 reference of the projection head."""
    w1, b1, w2, b2 = params
    x = jnp.squeeze(mol_gnn_out, axis=1)
    return jnp.maximum(x @ w1 + b1, 0.0) @ w2 + b2


if __name__ == "__main__":
    key = jax.random.PRNGKey(0)
    k_in, k_in2, k_par = jax.random.split(key, 3)
    params = init_params(k_par)

    # Small even batch (single grid step).
    B = 8
    mol_gnn_out = jax.random.normal(k_in, (B, 1, LATENT), jnp.float32)
    out = jax.block_until_ready(med_model_forward(mol_gnn_out, params))
    ref = _reference(mol_gnn_out, params)
    assert out.shape == (B, LATENT)
    # bf16 matmul operands with f32 accumulation -> looser tolerance vs f32 ref.
    assert jnp.allclose(out, ref, atol=1e-1, rtol=1e-2), float(
        jnp.max(jnp.abs(out - ref)))

    # Ragged batch (exercises tail padding and a multi-step "parallel" grid).
    B2 = 20
    mol_gnn_out2 = jax.random.normal(k_in2, (B2, 1, LATENT), jnp.float32)
    out2 = jax.block_until_ready(med_model_forward(mol_gnn_out2, params))
    ref2 = _reference(mol_gnn_out2, params)
    assert out2.shape == (B2, LATENT)
    assert jnp.allclose(out2, ref2, atol=1e-1, rtol=1e-2), float(
        jnp.max(jnp.abs(out2 - ref2)))

    print("KERNEL_OK")
</pallas_src>

<mosaic_0001>
module attributes {stable_mosaic.version = 11 : i64} {
  func.func @proj_mlp_kernel(%arg0: i32, %arg1: memref<8x1x128xf32, #tpu.memory_space<vmem>>, %arg2: memref<128x128xbf16, #tpu.memory_space<vmem>>, %arg3: memref<1x128xf32, #tpu.memory_space<vmem>>, %arg4: memref<128x128xbf16, #tpu.memory_space<vmem>>, %arg5: memref<1x128xf32, #tpu.memory_space<vmem>>, %arg6: memref<8x128xf32, #tpu.memory_space<vmem>>) attributes {dimension_semantics = [#tpu.dimension_semantics<parallel>], iteration_bounds = array<i64: 1>, scalar_prefetch = 0 : i64, scratch_operands = 0 : i64, tpu.core_type = #tpu.core_type<tc>, window_params = [{transform_indices = @transform_0, window_bounds = array<i64: 8, 1, 128>}, {pipeline_mode = #tpu.pipeline_mode<synchronous>, transform_indices = @transform_1, window_bounds = array<i64: 128, 128>}, {pipeline_mode = #tpu.pipeline_mode<synchronous>, transform_indices = @transform_2, window_bounds = array<i64: 1, 128>}, {pipeline_mode = #tpu.pipeline_mode<synchronous>, transform_indices = @transform_3, window_bounds = array<i64: 128, 128>}, {pipeline_mode = #tpu.pipeline_mode<synchronous>, transform_indices = @transform_4, window_bounds = array<i64: 1, 128>}, {transform_indices = @transform_5, window_bounds = array<i64: 8, 128>}]} {
    %c0 = arith.constant 0 : index
    %c0_0 = arith.constant 0 : index
    %c0_1 = arith.constant 0 : index
    %0 = vector.load %arg1[%c0, %c0_0, %c0_1] : memref<8x1x128xf32, #tpu.memory_space<vmem>>, vector<8x1x128xf32>
    %1 = vector.shape_cast %0 : vector<8x1x128xf32> to vector<8x128xf32>
    %2 = arith.truncf %1 : vector<8x128xf32> to vector<8x128xbf16>
    %c0_2 = arith.constant 0 : index
    %c0_3 = arith.constant 0 : index
    %3 = vector.load %arg2[%c0_2, %c0_3] : memref<128x128xbf16, #tpu.memory_space<vmem>>, vector<128x128xbf16>
    %cst = arith.constant dense<0.000000e+00> : vector<8x128xf32>
    %4 = tpu.matmul %2, %3, %cst {dimension_numbers = #tpu.dot_dimension_numbers<[1], [0], [0], [1], [0, 0, 1, 1], [], []>} : vector<8x128xbf16>, vector<128x128xbf16>, vector<8x128xf32> -> vector<8x128xf32>
    %c0_4 = arith.constant 0 : index
    %c0_5 = arith.constant 0 : index
    %5 = vector.load %arg3[%c0_4, %c0_5] : memref<1x128xf32, #tpu.memory_space<vmem>>, vector<1x128xf32>
    %6 = vector.broadcast %5 : vector<1x128xf32> to vector<8x128xf32>
    %7 = arith.addf %4, %6 : vector<8x128xf32>
    %cst_6 = arith.constant 0.000000e+00 : f32
    %8 = vector.broadcast %cst_6 : f32 to vector<8x128xf32>
    %9 = arith.maximumf %7, %8 : vector<8x128xf32>
    %10 = arith.truncf %9 : vector<8x128xf32> to vector<8x128xbf16>
    %c0_7 = arith.constant 0 : index
    %c0_8 = arith.constant 0 : index
    %11 = vector.load %arg4[%c0_7, %c0_8] : memref<128x128xbf16, #tpu.memory_space<vmem>>, vector<128x128xbf16>
    %cst_9 = arith.constant dense<0.000000e+00> : vector<8x128xf32>
    %12 = tpu.matmul %10, %11, %cst_9 {dimension_numbers = #tpu.dot_dimension_numbers<[1], [0], [0], [1], [0, 0, 1, 1], [], []>} : vector<8x128xbf16>, vector<128x128xbf16>, vector<8x128xf32> -> vector<8x128xf32>
    %c0_10 = arith.constant 0 : index
    %c0_11 = arith.constant 0 : index
    %13 = vector.load %arg5[%c0_10, %c0_11] : memref<1x128xf32, #tpu.memory_space<vmem>>, vector<1x128xf32>
    %14 = vector.broadcast %13 : vector<1x128xf32> to vector<8x128xf32>
    %15 = arith.addf %12, %14 : vector<8x128xf32>
    %c0_12 = arith.constant 0 : index
    %c0_13 = arith.constant 0 : index
    %16 = vector.load %arg6[%c0_12, %c0_13] : memref<8x128xf32, #tpu.memory_space<vmem>>, vector<8x128xf32>
    tpu.vector_store %arg6[%c0_12, %c0_13], %15 {strides = array<i32>} : memref<8x128xf32, #tpu.memory_space<vmem>>, vector<8x128xf32>,
    return
  }
  func.func @transform_0(%arg0: i32) -> (i32, i32, i32) {
    %c0_i32 = arith.constant 0 : i32
    %c0_i32_0 = arith.constant 0 : i32
    %c0_i32_1 = arith.constant 0 : i32
    return %arg0, %c0_i32, %c0_i32_0 : i32, i32, i32
  }
  func.func @transform_1(%arg0: i32) -> (i32, i32) {
    %c0_i32 = arith.constant 0 : i32
    %c0_i32_0 = arith.constant 0 : i32
    %c0_i32_1 = arith.constant 0 : i32
    return %c0_i32, %c0_i32_0 : i32, i32
  }
  func.func @transform_2(%arg0: i32) -> (i32, i32) {
    %c0_i32 = arith.constant 0 : i32
    %c0_i32_0 = arith.constant 0 : i32
    %c0_i32_1 = arith.constant 0 : i32
    return %c0_i32, %c0_i32_0 : i32, i32
  }
  func.func @transform_3(%arg0: i32) -> (i32, i32) {
    %c0_i32 = arith.constant 0 : i32
    %c0_i32_0 = arith.constant 0 : i32
    %c0_i32_1 = arith.constant 0 : i32
    return %c0_i32, %c0_i32_0 : i32, i32
  }
  func.func @transform_4(%arg0: i32) -> (i32, i32) {
    %c0_i32 = arith.constant 0 : i32
    %c0_i32_0 = arith.constant 0 : i32
    %c0_i32_1 = arith.constant 0 : i32
    return %c0_i32, %c0_i32_0 : i32, i32
  }
  func.func @transform_5(%arg0: i32) -> (i32, i32) {
    %c0_i32 = arith.constant 0 : i32
    %c0_i32_0 = arith.constant 0 : i32
    return %arg0, %c0_i32 : i32, i32
  }
}

</mosaic_0001>

<bundles_post_ra>
// kernel: tpu_custom_call.1
= control target key start
LH: loop header
LB: loop body
LE: loop exit
PB: predicated region body
PF: predicated region fallthrough
CT: control target
= control target key end

     0   :  { %10 = vsyncpa [#allocation3], 0  ;;  %s676_s0 = inlined_call_operand.hbm [shape: f32[8,1,128], index: 0, kind: input, shape index: {}]   ;;  %s677_s1 = inlined_call_operand.hbm [shape: bf16[128,128], index: 1, kind: input, shape index: {}]   ;;  %s678_s2 = inlined_call_operand.vmem [shape: f32[1,128], index: 2, kind: input, shape index: {}]   ;;  %s679_s3 = inlined_call_operand.hbm [shape: bf16[128,128], index: 3, kind: input, shape index: {}]   ;;  %s680_s4 = inlined_call_operand.vmem [shape: f32[1,128], index: 4, kind: input, shape index: {}]   ;;  %s681_s5 = inlined_call_operand.hbm [shape: f32[8,128], index: 5, kind: output, shape index: {}]  }
   0x1   :  { %11 = vsyncpa [#allocation6], 0 }
   0x2   :  { %12 = vsyncpa [#allocation4], 0  ;;  %s555_s18 = smov [#allocation5]   ;;  %s461_s22 = scalar_lea.hbm %s677_s1, 1024 }
   0x3   :  { %s30_s19 = sshll.u32 %s555_s18, 4  ;;  %p462_p0 = scmp.ne.s32.totalorder %s677_s1, %s461_s22  ;;  %s31_s19 = int_to_ptr.vmem [resolvable:$true] %s30_s19 }
   0x4   :  { %p465_p1 = scmp.lt.u32.totalorder %s461_s22, %s677_s1 }
   0x6   :  { %p467_p2 = pnand %p465_p1, %p462_p0 }
   0x8   :  { %470 = shalt.err (!%p467_p2)
}
   0x9   :  { %s471_s27 = scalar_lea.vmem %s31_s19, 1024  ;;  %p476_p4 = scmp.lt.s32.totalorder %s31_s19, %s31_s19 }
   0xa   :  { %p472_p3 = scmp.ne.s32.totalorder %s31_s19, %s471_s27  ;;  %p477_p5 = scmp.lt.s32.totalorder %s471_s27, %s471_s27 }
   0xc   :  { %p478_p6 = por %p477_p5, %p476_p4 }
   0xe   :  { %p479_p7 = pnand %p478_p6, %p472_p3 }
  0x10   :  { %482 = shalt.err (!%p479_p7)
}
  0x11   :  { %s556_s28 = smov 64   ;;  %s557_s29 = smov 4  }
  0x12   :  { %36 = dma.hbm_to_vmem [thread:$0]  %s677_s1, 1024, %s31_s19, [#allocation6], %s556_s28, %s556_s28, %s557_s29  }
  0x13   :  { %s558_s7 = smov [#allocation2]   ;;  %s483_s11 = scalar_lea.hbm %s676_s0, 128 }
  0x14   :  { %s18_s8 = sshll.u32 %s558_s7, 4  ;;  %p484_p8 = scmp.ne.s32.totalorder %s676_s0, %s483_s11  ;;  %s19_s8 = int_to_ptr.vmem [resolvable:$true] %s18_s8 }
  0x15   :  { %p487_p9 = scmp.lt.u32.totalorder %s483_s11, %s676_s0 }
  0x17   :  { %p489_p10 = pnand %p487_p9, %p484_p8 }
  0x19   :  { %492 = shalt.err (!%p489_p10)
}
  0x1a   :  { %s493_s16 = scalar_lea.vmem %s19_s8, 128  ;;  %p498_p12 = scmp.lt.s32.totalorder %s19_s8, %s19_s8 }
  0x1b   :  { %p494_p11 = scmp.ne.s32.totalorder %s19_s8, %s493_s16  ;;  %p499_p13 = scmp.lt.s32.totalorder %s493_s16, %s493_s16 }
  0x1d   :  { %p500_p0 = por %p499_p13, %p498_p12 }
  0x1f   :  { %p501_p1 = pnand %p500_p0, %p494_p11 }
  0x21   :  { %504 = shalt.err (!%p501_p1)
}
  0x22   :  { %s559_s1 = smov 16   ;;  %s560_s17 = smov 1  }
  0x23   :  { %24 = dma.hbm_to_vmem [thread:$0]  %s676_s0, 128, %s19_s8, [#allocation3], %s559_s1, %s559_s1, %s560_s17  }
  0x24   :  { %s561_s20 = smov [#allocation7]   ;;  %s505_s24 = scalar_lea.hbm %s679_s3, 1024 }
  0x25   :  { %s44_s21 = sshll.u32 %s561_s20, 4  ;;  %p506_p2 = scmp.ne.s32.totalorder %s679_s3, %s505_s24  ;;  %s45_s21 = int_to_ptr.vmem [resolvable:$true] %s44_s21 }
  0x26   :  { %p509_p3 = scmp.lt.u32.totalorder %s505_s24, %s679_s3 }
  0x28   :  { %p511_p4 = pnand %p509_p3, %p506_p2 }
  0x2a   :  { %514 = shalt.err (!%p511_p4)
}
  0x2b   :  { %s515_s6 = scalar_lea.vmem %s45_s21, 1024  ;;  %p520_p6 = scmp.lt.s32.totalorder %s45_s21, %s45_s21 }
  0x2c   :  { %p516_p5 = scmp.ne.s32.totalorder %s45_s21, %s515_s6  ;;  %p521_p7 = scmp.lt.s32.totalorder %s515_s6, %s515_s6 }
  0x2e   :  { %p522_p8 = por %p521_p7, %p520_p6 }
  0x30   :  { %p523_p9 = pnand %p522_p8, %p516_p5 }
  0x32   :  { %526 = shalt.err (!%p523_p9)
}
  0x33   :  { %50 = dma.hbm_to_vmem [thread:$0]  %s679_s3, 1024, %s45_s21, [#allocation6], %s556_s28, %s556_s28, %s557_s29  }
  0x34   :  { %549 = dma.done.wait [#allocation3], 128  }
  0x35   :  { %550 = vsyncadd [#allocation3], 4294967168 }
  0x36   :  { %551 = dma.done.wait [#allocation6], 2048  }
  0x37   :  { %552 = vsyncadd [#allocation6], 4294965248  ;;  %v562_v0 = vmov 0.0   ;;  %vm563_vm0 = vmmov 0   ;;  %v445_v1 = vld [vmem:[#allocation5] sm:$0xff]   ;;  %v446_v2 = vld [vmem:[#allocation5 + $0x8] sm:$0xff]  }
  0x38   :  { %395 = vmatprep.subr.bf16.mxu0 %v562_v0  ;;  %411 = vmatprep.mubr.msk.bf16.mxu0 %vm563_vm0, %v562_v0  ;;  %v447_v3 = vld [vmem:[#allocation5 + $0x10] sm:$0xff]   ;;  %vm119_vm1 = vcmask 1041409   ;;  %vm122_vm2 = vcmask 1042434   ;;  %v448_v4 = vld [vmem:[#allocation5 + $0x18] sm:$0xff]   ;;  %vm125_vm3 = vcmask 1043459   ;;  %v453_v22 = vld [vmem:[#allocation7] sm:$0xff]  }
  0x39   :  { %415 = vmatprep.subr.bf16.mxu1 %v562_v0  ;;  %431 = vmatprep.mubr.msk.bf16.mxu1 %vm563_vm0, %v562_v0  ;;  %v63_v5 = vld [vmem:[#allocation2] sm:$0x1]  ;;  %v64_v6 = vld [vmem:[#allocation2 + $0x1] sm:$0x1]  ;;  %v65_v7 = vld [vmem:[#allocation2 + $0x2] sm:$0x1] }
  0x3a   :  { %396 = vmatpush3.bf16.msra.mxu0 %v445_v1  ;;  %v66_v8 = vld [vmem:[#allocation2 + $0x3] sm:$0x1]  ;;  %v67_v9 = vld [vmem:[#allocation2 + $0x4] sm:$0x1]  ;;  %v68_v10 = vld [vmem:[#allocation2 + $0x5] sm:$0x1]  ;;  %v71_v11 = vpack.c.bf16 %v63_v5, %v63_v5  ;;  %v72_v12 = vpack.c.bf16 %v64_v6, %v64_v6  ;;  %v73_v13 = vpack.c.bf16 %v65_v7, %v65_v7  ;;  %416 = vmatpush3.bf16.msra.mxu1 %v453_v22 }
  0x3b   :  { %397 = vmatprep.subr.bf16.mxu0 %v562_v0  ;;  %v69_v14 = vld [vmem:[#allocation2 + $0x6] sm:$0x1]  ;;  %v70_v15 = vld [vmem:[#allocation2 + $0x7] sm:$0x1]  ;;  %v74_v16 = vpack.c.bf16 %v66_v8, %v66_v8  ;;  %v75_v17 = vpack.c.bf16 %v67_v9, %v67_v9  ;;  %v76_v18 = vpack.c.bf16 %v68_v10, %v68_v10  ;;  %v454_v28 = vld [vmem:[#allocation7 + $0x8] sm:$0xff]   ;;  %417 = vmatprep.subr.bf16.mxu1 %v562_v0  ;;  %vm128_vm4 = vcmask 1044484  }
  0x3c   :  { %v77_v19 = vpack.c.bf16 %v69_v14, %v69_v14  ;;  %v110_v20 = vunpack.c.l.b16 %v71_v11  ;;  %v111_v21 = vunpack.c.l.b16 %v72_v12  ;;  %v112_v23 = vunpack.c.l.b16 %v73_v13  ;;  %v449_v29 = vld [vmem:[#allocation5 + $0x20] sm:$0xff]   ;;  %v450_v38 = vld [vmem:[#allocation5 + $0x28] sm:$0xff]   ;;  %v455_v40 = vld [vmem:[#allocation7 + $0x10] sm:$0xff]   ;;  %s564_s9 = smov [#allocation8]  }
  0x3d   :  { %v113_v24 = vunpack.c.l.b16 %v74_v16  ;;  %v114_v25 = vunpack.c.l.b16 %v75_v17  ;;  %v115_v26 = vunpack.c.l.b16 %v76_v18  ;;  %v78_v30 = vpack.c.bf16 %v70_v15, %v70_v15  ;;  %v456_v45 = vld [vmem:[#allocation7 + $0x18] sm:$0xff]   ;;  %v451_v46 = vld [vmem:[#allocation5 + $0x30] sm:$0xff]   ;;  %v457_v49 = vld [vmem:[#allocation7 + $0x20] sm:$0xff]   ;;  %s349_s10 = sshll.u32 %s564_s9, 4  ;;  %s350_s10 = int_to_ptr.vmem [resolvable:$true] %s349_s10 }
  0x3e   :  { %398 = vmatpush3.bf16.msra.mxu0 %v446_v2  ;;  %v118_v27 = vrot.slane %v111_v21, 7  ;;  %v121_v31 = vrot.slane %v112_v23, 6  ;;  %v116_v34 = vunpack.c.l.b16 %v77_v19  ;;  %vm131_vm5 = vcmask 1045509   ;;  %418 = vmatpush3.bf16.msra.mxu1 %v454_v28  ;;  %v452_v50 = vld [vmem:[#allocation5 + $0x38] sm:$0xff]   ;;  %v458_v53 = vld [vmem:[#allocation7 + $0x28] sm:$0xff]   ;;  %v459_v54 = vld [vmem:[#allocation7 + $0x30] sm:$0xff]   ;;  %p532_p11 = scmp.lt.s32.totalorder %s350_s10, %s350_s10 }
  0x3f   :  { %399 = vmatprep.subr.bf16.mxu0 %v562_v0  ;;  %v124_v32 = vrot.slane %v113_v24, 5  ;;  %v127_v33 = vrot.slane %v114_v25, 4  ;;  %v130_v36 = vrot.slane %v115_v26, 3  ;;  %v117_v41 = vunpack.c.l.b16 %v78_v30  ;;  %419 = vmatprep.subr.bf16.mxu1 %v562_v0  ;;  %v460_v55 = vld [vmem:[#allocation7 + $0x38] sm:$0xff]  }
  0x40   :  { %v120_v35 = vsel %vm119_vm1, %v118_v27, %v110_v20  ;;  %v133_v43 = vrot.slane %v116_v34, 2  ;;  %vm134_vm6 = vcmask 1046534   ;;  %vm137_vm7 = vcmask 1047559   ;;  %v359_v56 = vld [vmem:[%s678_s2] ss:$0 sm:$0xff]  ;;  %s527_s2 = scalar_lea.vmem %s350_s10, 128 }
  0x41   :  { %v123_v37 = vsel %vm122_vm2, %v121_v31, %v120_v35  ;;  %v136_v47 = vrot.slane %v117_v41, 1  ;;  %v368_v1 = vld [vmem:[%s680_s4] ss:$0 sm:$0xff]  ;;  %p528_p10 = scmp.ne.s32.totalorder %s350_s10, %s527_s2  ;;  %p533_p12 = scmp.lt.s32.totalorder %s527_s2, %s527_s2 }
  0x42   :  { %400 = vmatpush3.bf16.msra.mxu0 %v447_v3  ;;  %v126_v39 = vsel %vm125_vm3, %v124_v32, %v123_v37  ;;  %420 = vmatpush3.bf16.msra.mxu1 %v455_v40 }
  0x43   :  { %401 = vmatprep.subr.bf16.mxu0 %v562_v0  ;;  %v129_v42 = vsel %vm128_vm4, %v127_v33, %v126_v39  ;;  %421 = vmatprep.subr.bf16.mxu1 %v562_v0  ;;  %p534_p13 = por %p533_p12, %p532_p11 }
  0x44   :  { %v132_v44 = vsel %vm131_vm5, %v130_v36, %v129_v42 }
  0x45   :  { %v135_v48 = vsel %vm134_vm6, %v133_v43, %v132_v44  ;;  %p535_p0 = pnand %p534_p13, %p528_p10 }
  0x46   :  { %402 = vmatpush3.bf16.msra.mxu0 %v448_v4  ;;  %422 = vmatpush3.bf16.msra.mxu1 %v456_v45  ;;  %v138_v51 = vsel %vm137_vm7, %v136_v47, %v135_v48 }
  0x47   :  { %403 = vmatprep.subr.bf16.mxu0 %v562_v0  ;;  %423 = vmatprep.subr.bf16.mxu1 %v562_v0  ;;  %v139_v52 = vpack.c.b16 %v138_v51, %v138_v51 }
  0x4a   :  { %404 = vmatpush3.bf16.msra.mxu0 %v449_v29  ;;  %424 = vmatpush3.bf16.msra.mxu1 %v457_v49 }
  0x4b   :  { %405 = vmatprep.subr.bf16.mxu0 %v562_v0  ;;  %425 = vmatprep.subr.bf16.mxu1 %v562_v0 }
  0x4e   :  { %406 = vmatpush3.bf16.msra.mxu0 %v450_v38  ;;  %426 = vmatpush3.bf16.msra.mxu1 %v458_v53 }
  0x4f   :  { %407 = vmatprep.subr.bf16.mxu0 %v562_v0  ;;  %427 = vmatprep.subr.bf16.mxu1 %v562_v0 }
  0x52   :  { %408 = vmatpush3.bf16.msra.mxu0 %v451_v46  ;;  %428 = vmatpush3.bf16.msra.mxu1 %v459_v54 }
  0x53   :  { %409 = vmatprep.subr.bf16.mxu0 %v562_v0  ;;  %429 = vmatprep.subr.bf16.mxu1 %v562_v0 }
  0x56   :  { %410 = vmatpush3.bf16.msra.mxu0 %v452_v50  ;;  %430 = vmatpush3.bf16.msra.mxu1 %v460_v55 }
  0x59   :  { %412 = vmatmul.mubr.bf16.vlgmr.msra.gmra.mrb[0].mxu0 %v139_v52 }
 0x12c   :  { %v223_v57 = vpop.f32.mrb[0].mxu0 }
 0x12d   :  { %v224_v58 = vadd.f32 %v359_v56, %v223_v57  ;;  %v413_v59 = vpop.f32.mrb[1].mxu0 }
 0x12e   :  { %v226_v60 = vpop.f32.mrb[2].mxu0 }
 0x12f   :  { %v229_v61 = vmax.f32 %v224_v58, 0.0  ;;  %v414_v62 = vpop.f32.mrb[3].mxu0 }
 0x131   :  { %v230_v63 = vpack.c.bf16 %v229_v61, %v229_v61 }
 0x133   :  { %432 = vmatmul.mubr.bf16.vlgmr.msra.gmra.mrb[0].mxu1 %v230_v63 }
 0x206   :  { %v336_v0 = vpop.f32.mrb[0].mxu1 }
 0x207   :  { %v337_v2 = vadd.f32 %v368_v1, %v336_v0  ;;  %v433_v3 = vpop.f32.mrb[1].mxu1 }
 0x208   :  { %v339_v4 = vpop.f32.mrb[2].mxu1 }
 0x209   :  { %342 = vst [vmem:[#allocation8] sm:$0xff] %v337_v2  ;;  %v434_v5 = vpop.f32.mrb[3].mxu1 }
 0x20a   :  { %538 = shalt.err (!%p535_p0)
}
 0x20b   :  { %s539_s4 = scalar_lea.hbm %s681_s5, 128 }
 0x20c   :  { %p540_p1 = scmp.ne.s32.totalorder %s681_s5, %s539_s4  ;;  %p543_p2 = scmp.lt.u32.totalorder %s539_s4, %s681_s5 }
 0x20e   :  { %p545_p3 = pnand %p543_p2, %p540_p1 }
 0x210   :  { %548 = shalt.err (!%p545_p3)
}
 0x211   :  { %352 = dma.vmem_to_hbm [thread:$0]  %s350_s10, 128, %s681_s5, [#allocation4]  }
 0x212   :  { %553 = dma.done.wait [#allocation4], 128  }
 0x213   :  { %554 = vsyncadd [#allocation4], 4294967168 }
 0x214   :  { %356 = vsyncpa [#allocation3], 1 }
 0x215   :  { %357 = vsyncpa [#allocation6], 1 }
 0x216   :  { %358 = vsyncpa [#allocation4], 1 }

</bundles_post_ra>
